<compile_context>
chip_gen: v5e
topology: v5e:2x2
jax: 0.10.0
libtpu: 0.0.40
codegen_flags: <defaults>
</compile_context>

<pallas_src>
import functools

import jax
import jax.numpy as jnp
from jax.experimental import pallas as pl
from jax.experimental.pallas import tpu as pltpu

LN_EPS = 1e-6


def _round_up(x, m):
    return ((x + m - 1) // m) * m


def _vmem_capacity_bytes():
    """Physical VMEM per TensorCore (128 MiB v5e/v6e, 64 MiB v7x)."""
    try:
        info = pltpu.get_tpu_info()
        cap = getattr(info, "vmem_capacity_bytes", None)
        if cap:
            return int(cap)
    except Exception:
        pass
    return 64 * 1024 * 1024  # conservative (v7x-sized) fallback


def _vmem_limit_bytes():
    cap = _vmem_capacity_bytes()
    # ~48 MiB on v7x (64 MiB/TC), ~96 MiB on v5e/v6e (128 MiB/TC); keep headroom.
    return max(32 * 1024 * 1024, min(int(cap * 0.75), 100 * 1024 * 1024))


def prepare_ffn_params(gamma, beta, w1, b1, w2, b2):
    """One-time host-side prep: 128-pad, cast weights to bf16, pick d_hid chunking.

    Do this once per model, not per forward call (wrapper hygiene).
    Weights are expected in (in, out) layout.
    """
    d_in, d_hid = w1.shape
    d_in_p = _round_up(d_in, 128)
    d_hid_p = _round_up(d_hid, 128)

    # d_hid chunking: fully-resident (single-buffered) bf16 weights must fit in
    # ~half of the VMEM budget; otherwise stream W1 columns / W2 rows in chunks
    # (default depth-2 buffering so DMA hides behind MXU work).
    weight_budget = _vmem_limit_bytes() // 2
    full_w_bytes = 2 * d_in_p * d_hid_p * 2  # W1 + W2, bf16, single buffer
    if full_w_bytes <= weight_budget:
        tkh = d_hid_p
    else:
        # double-buffered chunks: 2 bufs * (W1 + W2 chunk) * 2 B = 8*d_in_p*tkh bytes
        tkh = (weight_budget // (8 * d_in_p)) // 128 * 128
        tkh = max(128, min(tkh, d_hid_p))
    d_hid_pp = _round_up(d_hid_p, tkh)

    f32 = jnp.float32
    return dict(
        d_in=d_in,
        d_in_p=d_in_p,
        d_hid_pp=d_hid_pp,
        tkh=tkh,
        gamma=jnp.pad(gamma.astype(f32), (0, d_in_p - d_in)).reshape(1, d_in_p),
        beta=jnp.pad(beta.astype(f32), (0, d_in_p - d_in)).reshape(1, d_in_p),
        b1=jnp.pad(b1.astype(f32), (0, d_hid_pp - d_hid)).reshape(1, d_hid_pp),
        b2=jnp.pad(b2.astype(f32), (0, d_in_p - d_in)).reshape(1, d_in_p),
        w1=jnp.pad(w1, ((0, d_in_p - d_in), (0, d_hid_pp - d_hid))).astype(jnp.bfloat16),
        w2=jnp.pad(w2, ((0, d_hid_pp - d_hid), (0, d_in_p - d_in))).astype(jnp.bfloat16),
    )


def ffn_kernel(x_ref, gamma_ref, beta_ref, w1_ref, b1_ref, w2_ref, b2_ref,
               o_ref, xn_ref, acc_ref, *, d_in_actual):
    """Grid = (row tiles, d_hid chunks).  Accumulates y over hidden chunks."""
    k = pl.program_id(1)
    nk = pl.num_programs(1)

    # --- LayerNorm once per row tile (k == 0); cache result as bf16 ---
    @pl.when(k == 0)
    def _():
        x = x_ref[...].astype(jnp.float32)          # padded feature cols are zero
        d_pad = x.shape[-1]
        inv_d = 1.0 / d_in_actual
        mean = jnp.sum(x, axis=-1, keepdims=True) * inv_d
        centered = x - mean
        if d_in_actual != d_pad:
            mask = (jax.lax.broadcasted_iota(jnp.int32, (1, d_pad), 1)
                    < d_in_actual).astype(jnp.float32)
            centered = centered * mask               # padded cols don't feed variance
        var = jnp.sum(centered * centered, axis=-1, keepdims=True) * inv_d
        xn = centered * jax.lax.rsqrt(var + LN_EPS)
        xn = xn * gamma_ref[...] + beta_ref[...]     # padded gamma/beta = 0
        xn_ref[...] = xn.astype(jnp.bfloat16)
        acc_ref[...] = jnp.zeros_like(acc_ref)

    # --- FFN chunk: relu(xn @ W1[:, chunk] + b1[chunk]) @ W2[chunk, :] ---
    h = jnp.dot(xn_ref[...], w1_ref[...],
                preferred_element_type=jnp.float32) + b1_ref[...]
    h = jnp.maximum(h, 0.0).astype(jnp.bfloat16)
    acc_ref[...] += jnp.dot(h, w2_ref[...], preferred_element_type=jnp.float32)

    # TODO(synk): dropout omitted (identity in eval mode).
    # --- finalize: +b2, residual (pre-LayerNorm x), write output ---
    @pl.when(k == nk - 1)
    def _():
        o_ref[...] = (acc_ref[...] + b2_ref[...]
                      + x_ref[...].astype(jnp.float32)).astype(o_ref.dtype)


def positionwise_ffn(x, params, *, tm=None):
    """x: [B, S, d_in] (f32 or bf16).  params: output of prepare_ffn_params."""
    B, S, d_in = x.shape
    assert d_in == params["d_in"]
    d_in_p = params["d_in_p"]
    d_hid_pp = params["d_hid_pp"]
    tkh = params["tkh"]
    nk = d_hid_pp // tkh
    M = B * S

    vmem_cap = _vmem_capacity_bytes()
    big_vmem = vmem_cap >= 96 * 1024 * 1024
    if tm is None:
        tm = 512 if big_vmem else 256                # bigger tiles on 128-MiB chips

    tm_eff = _round_up(min(tm, _round_up(M, 8)), 8)
    M_pad = _round_up(M, tm_eff)
    # Keep >= 2 row steps so ("parallel", ...) can shard rows across both v7x TCs.
    if M_pad // tm_eff < 2 and M >= 16:
        tm_eff = _round_up(pl.cdiv(M, 2), 8)
        M_pad = _round_up(M, tm_eff)

    x2d = x.reshape(M, d_in)
    needs_pad = (M_pad != M) or (d_in_p != d_in)
    if needs_pad:
        x2d = jnp.pad(x2d, ((0, M_pad - M), (0, d_in_p - d_in)))

    grid = (M_pad // tm_eff, nk)
    kernel = functools.partial(ffn_kernel, d_in_actual=d_in)

    itemsize = jnp.dtype(x.dtype).itemsize
    cost = pl.CostEstimate(
        flops=2 * 2 * M_pad * d_in_p * d_hid_pp,
        transcendentals=M_pad,
        bytes_accessed=2 * M_pad * d_in_p * itemsize
        + (params["w1"].size + params["w2"].size) * 2,
    )

    def run(use_pipeline_mode):
        # Grid-invariant operands -> single buffer; chunked weights keep depth-2
        # (single buffer only when fully resident, i.e. nk == 1); deeper x
        # buffering only on 128-MiB chips.
        inv = pl.Buffered(1) if use_pipeline_mode else None
        wmode = (pl.Buffered(1) if nk == 1 else None) if use_pipeline_mode else None
        xmode = pl.Buffered(3) if (use_pipeline_mode and big_vmem) else None

        def spec(shape, idx, mode):
            if mode is None:
                return pl.BlockSpec(shape, idx)
            return pl.BlockSpec(shape, idx, pipeline_mode=mode)

        return pl.pallas_call(
            kernel,
            out_shape=jax.ShapeDtypeStruct((M_pad, d_in_p), x.dtype),
            grid_spec=pltpu.PrefetchScalarGridSpec(
                num_scalar_prefetch=0,
                grid=grid,
                in_specs=[
                    spec((tm_eff, d_in_p), lambda i, k: (i, 0), xmode),  # x tile
                    spec((1, d_in_p), lambda i, k: (0, 0), inv),         # gamma
                    spec((1, d_in_p), lambda i, k: (0, 0), inv),         # beta
                    spec((d_in_p, tkh), lambda i, k: (0, k), wmode),     # W1 chunk
                    spec((1, tkh), lambda i, k: (0, k), wmode),          # b1 chunk
                    spec((tkh, d_in_p), lambda i, k: (k, 0), wmode),     # W2 chunk
                    spec((1, d_in_p), lambda i, k: (0, 0), inv),         # b2
                ],
                out_specs=pl.BlockSpec((tm_eff, d_in_p), lambda i, k: (i, 0)),
                scratch_shapes=[
                    pltpu.VMEM((tm_eff, d_in_p), jnp.bfloat16),  # cached LayerNorm out
                    pltpu.VMEM((tm_eff, d_in_p), jnp.float32),   # y accumulator
                ],
            ),
            compiler_params=pltpu.CompilerParams(
                dimension_semantics=("parallel", "arbitrary"),
                vmem_limit_bytes=_vmem_limit_bytes(),
            ),
            cost_estimate=cost,
        )(x2d, params["gamma"], params["beta"], params["w1"], params["b1"],
          params["w2"], params["b2"])

    try:
        out = jax.block_until_ready(run(True))
    except Exception:
        # Fallback if this jax build rejects pipeline_mode / Buffered(1) here.
        out = run(False)

    if needs_pad:
        out = out[:M, :d_in]
    return out.reshape(B, S, d_in)


def reference(x, gamma, beta, w1, b1, w2, b2):
    mean = jnp.mean(x, axis=-1, keepdims=True)
    var = jnp.mean((x - mean) ** 2, axis=-1, keepdims=True)
    xn = (x - mean) / jnp.sqrt(var + LN_EPS) * gamma + beta
    h = jnp.maximum(xn @ w1 + b1, 0.0)
    y = h @ w2 + b2
    return y + x


if __name__ == "__main__":
    B, S, d_in, d_hid = 2, 8, 32, 64

    key = jax.random.PRNGKey(0)
    kx, k1, k2, kb1, kb2 = jax.random.split(key, 5)

    x = jax.random.normal(kx, (B, S, d_in), dtype=jnp.float32)

    # Deterministic parameter init (Linear stored in (in, out) layout).
    w1 = jax.random.normal(k1, (d_in, d_hid), dtype=jnp.float32) * 0.1
    b1 = jax.random.normal(kb1, (d_hid,), dtype=jnp.float32) * 0.1
    w2 = jax.random.normal(k2, (d_hid, d_in), dtype=jnp.float32) * 0.1
    b2 = jax.random.normal(kb2, (d_in,), dtype=jnp.float32) * 0.1
    gamma = jnp.ones((d_in,), dtype=jnp.float32)
    beta = jnp.zeros((d_in,), dtype=jnp.float32)

    params = prepare_ffn_params(gamma, beta, w1, b1, w2, b2)  # one-time prep
    out = positionwise_ffn(x, params)
    out = jax.block_until_ready(out)

    ref = reference(x, gamma, beta, w1, b1, w2, b2)
    assert out.shape == (B, S, d_in)
    # Tolerance loosened vs pure-f32: matmul inputs are bf16 (f32 accumulation).
    assert jnp.allclose(out, ref, atol=2e-2, rtol=2e-2), "mismatch vs reference"

    print("KERNEL_OK")
</pallas_src>

<mosaic_0001>
module attributes {stable_mosaic.version = 11 : i64} {
  func.func @ffn_kernel(%arg0: i32, %arg1: i32, %arg2: memref<8x128xf32, #tpu.memory_space<vmem>>, %arg3: memref<1x128xf32, #tpu.memory_space<vmem>>, %arg4: memref<1x128xf32, #tpu.memory_space<vmem>>, %arg5: memref<128x128xbf16, #tpu.memory_space<vmem>>, %arg6: memref<1x128xf32, #tpu.memory_space<vmem>>, %arg7: memref<128x128xbf16, #tpu.memory_space<vmem>>, %arg8: memref<1x128xf32, #tpu.memory_space<vmem>>, %arg9: memref<8x128xf32, #tpu.memory_space<vmem>>, %arg10: memref<8x128xbf16, #tpu.memory_space<vmem>>, %arg11: memref<8x128xf32, #tpu.memory_space<vmem>>) attributes {dimension_semantics = [#tpu.dimension_semantics<parallel>, #tpu.dimension_semantics<arbitrary>], iteration_bounds = array<i64: 2, 1>, scalar_prefetch = 0 : i64, scratch_operands = 2 : i64, tpu.core_type = #tpu.core_type<tc>, window_params = [{transform_indices = @transform_0, window_bounds = array<i64: 8, 128>}, {pipeline_mode = #tpu.pipeline_mode<synchronous>, transform_indices = @transform_1, window_bounds = array<i64: 1, 128>}, {pipeline_mode = #tpu.pipeline_mode<synchronous>, transform_indices = @transform_2, window_bounds = array<i64: 1, 128>}, {pipeline_mode = #tpu.pipeline_mode<synchronous>, transform_indices = @transform_3, window_bounds = array<i64: 128, 128>}, {pipeline_mode = #tpu.pipeline_mode<synchronous>, transform_indices = @transform_4, window_bounds = array<i64: 1, 128>}, {pipeline_mode = #tpu.pipeline_mode<synchronous>, transform_indices = @transform_5, window_bounds = array<i64: 128, 128>}, {pipeline_mode = #tpu.pipeline_mode<synchronous>, transform_indices = @transform_6, window_bounds = array<i64: 1, 128>}, {transform_indices = @transform_7, window_bounds = array<i64: 8, 128>}]} {
    %c0_i32 = arith.constant 0 : i32
    %0 = arith.cmpi eq, %arg1, %c0_i32 : i32
    %1 = arith.extui %0 : i1 to i32
    %c0_i32_0 = arith.constant 0 : i32
    %2 = arith.cmpi ne, %1, %c0_i32_0 : i32
    scf.if %2 {
      %c0_16 = arith.constant 0 : index
      %c0_17 = arith.constant 0 : index
      %20 = vector.load %arg2[%c0_16, %c0_17] : memref<8x128xf32, #tpu.memory_space<vmem>>, vector<8x128xf32>
      %cst_18 = arith.constant dense<0.000000e+00> : vector<8xf32>
      %21 = vector.multi_reduction <add>, %20, %cst_18 [1] : vector<8x128xf32> to vector<8xf32>
      %22 = vector.shape_cast %21 : vector<8xf32> to vector<8x1xf32>
      %cst_19 = arith.constant 3.125000e-02 : f32
      %23 = vector.broadcast %cst_19 : f32 to vector<8x1xf32>
      %24 = arith.mulf %22, %23 : vector<8x1xf32>
      %25 = vector.broadcast %24 : vector<8x1xf32> to vector<8x128xf32>
      %26 = arith.subf %20, %25 : vector<8x128xf32>
      %27 = tpu.iota {dimensions = array<i32: 1>} : vector<1x128xi32>
      %c32_i32 = arith.constant 32 : i32
      %28 = vector.broadcast %c32_i32 : i32 to vector<1x128xi32>
      %29 = arith.cmpi slt, %27, %28 : vector<1x128xi32>
      %30 = arith.extui %29 : vector<1x128xi1> to vector<1x128xi32>
      %31 = arith.sitofp %30 : vector<1x128xi32> to vector<1x128xf32>
      %32 = vector.broadcast %31 : vector<1x128xf32> to vector<8x128xf32>
      %33 = arith.mulf %26, %32 : vector<8x128xf32>
      %34 = arith.mulf %33, %33 : vector<8x128xf32>
      %cst_20 = arith.constant dense<0.000000e+00> : vector<8xf32>
      %35 = vector.multi_reduction <add>, %34, %cst_20 [1] : vector<8x128xf32> to vector<8xf32>
      %36 = vector.shape_cast %35 : vector<8xf32> to vector<8x1xf32>
      %cst_21 = arith.constant 3.125000e-02 : f32
      %37 = vector.broadcast %cst_21 : f32 to vector<8x1xf32>
      %38 = arith.mulf %36, %37 : vector<8x1xf32>
      %cst_22 = arith.constant 9.99999997E-7 : f32
      %39 = vector.broadcast %cst_22 : f32 to vector<8x1xf32>
      %40 = arith.addf %38, %39 : vector<8x1xf32>
      %41 = math.rsqrt %40 : vector<8x1xf32>
      %42 = vector.broadcast %41 : vector<8x1xf32> to vector<8x128xf32>
      %43 = arith.mulf %33, %42 : vector<8x128xf32>
      %c0_23 = arith.constant 0 : index
      %c0_24 = arith.constant 0 : index
      %44 = vector.load %arg3[%c0_23, %c0_24] : memref<1x128xf32, #tpu.memory_space<vmem>>, vector<1x128xf32>
      %45 = vector.broadcast %44 : vector<1x128xf32> to vector<8x128xf32>
      %46 = arith.mulf %43, %45 : vector<8x128xf32>
      %c0_25 = arith.constant 0 : index
      %c0_26 = arith.constant 0 : index
      %47 = vector.load %arg4[%c0_25, %c0_26] : memref<1x128xf32, #tpu.memory_space<vmem>>, vector<1x128xf32>
      %48 = vector.broadcast %47 : vector<1x128xf32> to vector<8x128xf32>
      %49 = arith.addf %46, %48 : vector<8x128xf32>
      %50 = arith.truncf %49 : vector<8x128xf32> to vector<8x128xbf16>
      %c0_27 = arith.constant 0 : index
      %c0_28 = arith.constant 0 : index
      %51 = vector.load %arg10[%c0_27, %c0_28] : memref<8x128xbf16, #tpu.memory_space<vmem>>, vector<8x128xbf16>
      tpu.vector_store %arg10[%c0_27, %c0_28], %50 {strides = array<i32>} : memref<8x128xbf16, #tpu.memory_space<vmem>>, vector<8x128xbf16>,
      %cst_29 = arith.constant 0.000000e+00 : f32
      %52 = vector.broadcast %cst_29 : f32 to vector<8x128xf32>
      %c0_30 = arith.constant 0 : index
      %c0_31 = arith.constant 0 : index
      %53 = vector.load %arg11[%c0_30, %c0_31] : memref<8x128xf32, #tpu.memory_space<vmem>>, vector<8x128xf32>
      tpu.vector_store %arg11[%c0_30, %c0_31], %52 {strides = array<i32>} : memref<8x128xf32, #tpu.memory_space<vmem>>, vector<8x128xf32>,
    } else {
    }
    %c0 = arith.constant 0 : index
    %c0_1 = arith.constant 0 : index
    %3 = vector.load %arg10[%c0, %c0_1] : memref<8x128xbf16, #tpu.memory_space<vmem>>, vector<8x128xbf16>
    %c0_2 = arith.constant 0 : index
    %c0_3 = arith.constant 0 : index
    %4 = vector.load %arg5[%c0_2, %c0_3] : memref<128x128xbf16, #tpu.memory_space<vmem>>, vector<128x128xbf16>
    %cst = arith.constant dense<0.000000e+00> : vector<8x128xf32>
    %5 = tpu.matmul %3, %4, %cst {dimension_numbers = #tpu.dot_dimension_numbers<[1], [0], [0], [1], [0, 0, 1, 1], [], []>} : vector<8x128xbf16>, vector<128x128xbf16>, vector<8x128xf32> -> vector<8x128xf32>
    %c0_4 = arith.constant 0 : index
    %c0_5 = arith.constant 0 : index
    %6 = vector.load %arg6[%c0_4, %c0_5] : memref<1x128xf32, #tpu.memory_space<vmem>>, vector<1x128xf32>
    %7 = vector.broadcast %6 : vector<1x128xf32> to vector<8x128xf32>
    %8 = arith.addf %5, %7 : vector<8x128xf32>
    %cst_6 = arith.constant 0.000000e+00 : f32
    %9 = vector.broadcast %cst_6 : f32 to vector<8x128xf32>
    %10 = arith.maximumf %8, %9 : vector<8x128xf32>
    %11 = arith.truncf %10 : vector<8x128xf32> to vector<8x128xbf16>
    %c0_7 = arith.constant 0 : index
    %c0_8 = arith.constant 0 : index
    %12 = vector.load %arg11[%c0_7, %c0_8] : memref<8x128xf32, #tpu.memory_space<vmem>>, vector<8x128xf32>
    %c0_9 = arith.constant 0 : index
    %c0_10 = arith.constant 0 : index
    %13 = vector.load %arg7[%c0_9, %c0_10] : memref<128x128xbf16, #tpu.memory_space<vmem>>, vector<128x128xbf16>
    %cst_11 = arith.constant dense<0.000000e+00> : vector<8x128xf32>
    %14 = tpu.matmul %11, %13, %cst_11 {dimension_numbers = #tpu.dot_dimension_numbers<[1], [0], [0], [1], [0, 0, 1, 1], [], []>} : vector<8x128xbf16>, vector<128x128xbf16>, vector<8x128xf32> -> vector<8x128xf32>
    %15 = arith.addf %12, %14 : vector<8x128xf32>
    %c0_12 = arith.constant 0 : index
    %c0_13 = arith.constant 0 : index
    %16 = vector.load %arg11[%c0_12, %c0_13] : memref<8x128xf32, #tpu.memory_space<vmem>>, vector<8x128xf32>
    tpu.vector_store %arg11[%c0_12, %c0_13], %15 {strides = array<i32>} : memref<8x128xf32, #tpu.memory_space<vmem>>, vector<8x128xf32>,
    %c0_i32_14 = arith.constant 0 : i32
    %17 = arith.cmpi eq, %arg1, %c0_i32_14 : i32
    %18 = arith.extui %17 : i1 to i32
    %c0_i32_15 = arith.constant 0 : i32
    %19 = arith.cmpi ne, %18, %c0_i32_15 : i32
    scf.if %19 {
      %c0_16 = arith.constant 0 : index
      %c0_17 = arith.constant 0 : index
      %20 = vector.load %arg11[%c0_16, %c0_17] : memref<8x128xf32, #tpu.memory_space<vmem>>, vector<8x128xf32>
      %c0_18 = arith.constant 0 : index
      %c0_19 = arith.constant 0 : index
      %21 = vector.load %arg8[%c0_18, %c0_19] : memref<1x128xf32, #tpu.memory_space<vmem>>, vector<1x128xf32>
      %22 = vector.broadcast %21 : vector<1x128xf32> to vector<8x128xf32>
      %23 = arith.addf %20, %22 : vector<8x128xf32>
      %c0_20 = arith.constant 0 : index
      %c0_21 = arith.constant 0 : index
      %24 = vector.load %arg2[%c0_20, %c0_21] : memref<8x128xf32, #tpu.memory_space<vmem>>, vector<8x128xf32>
      %25 = arith.addf %23, %24 : vector<8x128xf32>
      %c0_22 = arith.constant 0 : index
      %c0_23 = arith.constant 0 : index
      %26 = vector.load %arg9[%c0_22, %c0_23] : memref<8x128xf32, #tpu.memory_space<vmem>>, vector<8x128xf32>
      tpu.vector_store %arg9[%c0_22, %c0_23], %25 {strides = array<i32>} : memref<8x128xf32, #tpu.memory_space<vmem>>, vector<8x128xf32>,
    } else {
    }
    return
  }
  func.func @transform_0(%arg0: i32, %arg1: i32) -> (i32, i32) {
    %c0_i32 = arith.constant 0 : i32
    %c0_i32_0 = arith.constant 0 : i32
    return %arg0, %c0_i32 : i32, i32
  }
  func.func @transform_1(%arg0: i32, %arg1: i32) -> (i32, i32) {
    %c0_i32 = arith.constant 0 : i32
    %c0_i32_0 = arith.constant 0 : i32
    %c0_i32_1 = arith.constant 0 : i32
    return %c0_i32, %c0_i32_0 : i32, i32
  }
  func.func @transform_2(%arg0: i32, %arg1: i32) -> (i32, i32) {
    %c0_i32 = arith.constant 0 : i32
    %c0_i32_0 = arith.constant 0 : i32
    %c0_i32_1 = arith.constant 0 : i32
    return %c0_i32, %c0_i32_0 : i32, i32
  }
  func.func @transform_3(%arg0: i32, %arg1: i32) -> (i32, i32) {
    %c0_i32 = arith.constant 0 : i32
    %c0_i32_0 = arith.constant 0 : i32
    return %c0_i32, %arg1 : i32, i32
  }
  func.func @transform_4(%arg0: i32, %arg1: i32) -> (i32, i32) {
    %c0_i32 = arith.constant 0 : i32
    %c0_i32_0 = arith.constant 0 : i32
    return %c0_i32, %arg1 : i32, i32
  }
  func.func @transform_5(%arg0: i32, %arg1: i32) -> (i32, i32) {
    %c0_i32 = arith.constant 0 : i32
    %c0_i32_0 = arith.constant 0 : i32
    return %arg1, %c0_i32 : i32, i32
  }
  func.func @transform_6(%arg0: i32, %arg1: i32) -> (i32, i32) {
    %c0_i32 = arith.constant 0 : i32
    %c0_i32_0 = arith.constant 0 : i32
    %c0_i32_1 = arith.constant 0 : i32
    return %c0_i32, %c0_i32_0 : i32, i32
  }
  func.func @transform_7(%arg0: i32, %arg1: i32) -> (i32, i32) {
    %c0_i32 = arith.constant 0 : i32
    %c0_i32_0 = arith.constant 0 : i32
    return %arg0, %c0_i32 : i32, i32
  }
}

module attributes {stable_mosaic.version = 11 : i64} {
  func.func @ffn_kernel(%arg0: i32, %arg1: i32, %arg2: memref<8x128xf32, #tpu.memory_space<vmem>>, %arg3: memref<1x128xf32, #tpu.memory_space<vmem>>, %arg4: memref<1x128xf32, #tpu.memory_space<vmem>>, %arg5: memref<128x128xbf16, #tpu.memory_space<vmem>>, %arg6: memref<1x128xf32, #tpu.memory_space<vmem>>, %arg7: memref<128x128xbf16, #tpu.memory_space<vmem>>, %arg8: memref<1x128xf32, #tpu.memory_space<vmem>>, %arg9: memref<8x128xf32, #tpu.memory_space<vmem>>, %arg10: memref<8x128xbf16, #tpu.memory_space<vmem>>, %arg11: memref<8x128xf32, #tpu.memory_space<vmem>>) attributes {dimension_semantics = [#tpu.dimension_semantics<parallel>, #tpu.dimension_semantics<arbitrary>], iteration_bounds = array<i64: 2, 1>, scalar_prefetch = 0 : i64, scratch_operands = 2 : i64, tpu.core_type = #tpu.core_type<tc>, window_params = [{transform_indices = @transform_0, window_bounds = array<i64: 8, 128>}, {pipeline_mode = #tpu.pipeline_mode<synchronous>, transform_indices = @transform_1, window_bounds = array<i64: 1, 128>}, {pipeline_mode = #tpu.pipeline_mode<synchronous>, transform_indices = @transform_2, window_bounds = array<i64: 1, 128>}, {transform_indices = @transform_3, window_bounds = array<i64: 128, 128>}, {transform_indices = @transform_4, window_bounds = array<i64: 1, 128>}, {transform_indices = @transform_5, window_bounds = array<i64: 128, 128>}, {pipeline_mode = #tpu.pipeline_mode<synchronous>, transform_indices = @transform_6, window_bounds = array<i64: 1, 128>}, {transform_indices = @transform_7, window_bounds = array<i64: 8, 128>}]} {
    %c0_i32 = arith.constant 0 : i32
    %0 = arith.cmpi eq, %arg1, %c0_i32 : i32
    %1 = arith.extui %0 : i1 to i32
    %c0_i32_0 = arith.constant 0 : i32
    %2 = arith.cmpi ne, %1, %c0_i32_0 : i32
    scf.if %2 {
      %c0_16 = arith.constant 0 : index
      %c0_17 = arith.constant 0 : index
      %20 = vector.load %arg2[%c0_16, %c0_17] : memref<8x128xf32, #tpu.memory_space<vmem>>, vector<8x128xf32>
      %cst_18 = arith.constant dense<0.000000e+00> : vector<8xf32>
      %21 = vector.multi_reduction <add>, %20, %cst_18 [1] : vector<8x128xf32> to vector<8xf32>
      %22 = vector.shape_cast %21 : vector<8xf32> to vector<8x1xf32>
      %cst_19 = arith.constant 3.125000e-02 : f32
      %23 = vector.broadcast %cst_19 : f32 to vector<8x1xf32>
      %24 = arith.mulf %22, %23 : vector<8x1xf32>
      %25 = vector.broadcast %24 : vector<8x1xf32> to vector<8x128xf32>
      %26 = arith.subf %20, %25 : vector<8x128xf32>
      %27 = tpu.iota {dimensions = array<i32: 1>} : vector<1x128xi32>
      %c32_i32 = arith.constant 32 : i32
      %28 = vector.broadcast %c32_i32 : i32 to vector<1x128xi32>
      %29 = arith.cmpi slt, %27, %28 : vector<1x128xi32>
      %30 = arith.extui %29 : vector<1x128xi1> to vector<1x128xi32>
      %31 = arith.sitofp %30 : vector<1x128xi32> to vector<1x128xf32>
      %32 = vector.broadcast %31 : vector<1x128xf32> to vector<8x128xf32>
      %33 = arith.mulf %26, %32 : vector<8x128xf32>
      %34 = arith.mulf %33, %33 : vector<8x128xf32>
      %cst_20 = arith.constant dense<0.000000e+00> : vector<8xf32>
      %35 = vector.multi_reduction <add>, %34, %cst_20 [1] : vector<8x128xf32> to vector<8xf32>
      %36 = vector.shape_cast %35 : vector<8xf32> to vector<8x1xf32>
      %cst_21 = arith.constant 3.125000e-02 : f32
      %37 = vector.broadcast %cst_21 : f32 to vector<8x1xf32>
      %38 = arith.mulf %36, %37 : vector<8x1xf32>
      %cst_22 = arith.constant 9.99999997E-7 : f32
      %39 = vector.broadcast %cst_22 : f32 to vector<8x1xf32>
      %40 = arith.addf %38, %39 : vector<8x1xf32>
      %41 = math.rsqrt %40 : vector<8x1xf32>
      %42 = vector.broadcast %41 : vector<8x1xf32> to vector<8x128xf32>
      %43 = arith.mulf %33, %42 : vector<8x128xf32>
      %c0_23 = arith.constant 0 : index
      %c0_24 = arith.constant 0 : index
      %44 = vector.load %arg3[%c0_23, %c0_24] : memref<1x128xf32, #tpu.memory_space<vmem>>, vector<1x128xf32>
      %45 = vector.broadcast %44 : vector<1x128xf32> to vector<8x128xf32>
      %46 = arith.mulf %43, %45 : vector<8x128xf32>
      %c0_25 = arith.constant 0 : index
      %c0_26 = arith.constant 0 : index
      %47 = vector.load %arg4[%c0_25, %c0_26] : memref<1x128xf32, #tpu.memory_space<vmem>>, vector<1x128xf32>
      %48 = vector.broadcast %47 : vector<1x128xf32> to vector<8x128xf32>
      %49 = arith.addf %46, %48 : vector<8x128xf32>
      %50 = arith.truncf %49 : vector<8x128xf32> to vector<8x128xbf16>
      %c0_27 = arith.constant 0 : index
      %c0_28 = arith.constant 0 : index
      %51 = vector.load %arg10[%c0_27, %c0_28] : memref<8x128xbf16, #tpu.memory_space<vmem>>, vector<8x128xbf16>
      tpu.vector_store %arg10[%c0_27, %c0_28], %50 {strides = array<i32>} : memref<8x128xbf16, #tpu.memory_space<vmem>>, vector<8x128xbf16>,
      %cst_29 = arith.constant 0.000000e+00 : f32
      %52 = vector.broadcast %cst_29 : f32 to vector<8x128xf32>
      %c0_30 = arith.constant 0 : index
      %c0_31 = arith.constant 0 : index
      %53 = vector.load %arg11[%c0_30, %c0_31] : memref<8x128xf32, #tpu.memory_space<vmem>>, vector<8x128xf32>
      tpu.vector_store %arg11[%c0_30, %c0_31], %52 {strides = array<i32>} : memref<8x128xf32, #tpu.memory_space<vmem>>, vector<8x128xf32>,
    } else {
    }
    %c0 = arith.constant 0 : index
    %c0_1 = arith.constant 0 : index
    %3 = vector.load %arg10[%c0, %c0_1] : memref<8x128xbf16, #tpu.memory_space<vmem>>, vector<8x128xbf16>
    %c0_2 = arith.constant 0 : index
    %c0_3 = arith.constant 0 : index
    %4 = vector.load %arg5[%c0_2, %c0_3] : memref<128x128xbf16, #tpu.memory_space<vmem>>, vector<128x128xbf16>
    %cst = arith.constant dense<0.000000e+00> : vector<8x128xf32>
    %5 = tpu.matmul %3, %4, %cst {dimension_numbers = #tpu.dot_dimension_numbers<[1], [0], [0], [1], [0, 0, 1, 1], [], []>} : vector<8x128xbf16>, vector<128x128xbf16>, vector<8x128xf32> -> vector<8x128xf32>
    %c0_4 = arith.constant 0 : index
    %c0_5 = arith.constant 0 : index
    %6 = vector.load %arg6[%c0_4, %c0_5] : memref<1x128xf32, #tpu.memory_space<vmem>>, vector<1x128xf32>
    %7 = vector.broadcast %6 : vector<1x128xf32> to vector<8x128xf32>
    %8 = arith.addf %5, %7 : vector<8x128xf32>
    %cst_6 = arith.constant 0.000000e+00 : f32
    %9 = vector.broadcast %cst_6 : f32 to vector<8x128xf32>
    %10 = arith.maximumf %8, %9 : vector<8x128xf32>
    %11 = arith.truncf %10 : vector<8x128xf32> to vector<8x128xbf16>
    %c0_7 = arith.constant 0 : index
    %c0_8 = arith.constant 0 : index
    %12 = vector.load %arg11[%c0_7, %c0_8] : memref<8x128xf32, #tpu.memory_space<vmem>>, vector<8x128xf32>
    %c0_9 = arith.constant 0 : index
    %c0_10 = arith.constant 0 : index
    %13 = vector.load %arg7[%c0_9, %c0_10] : memref<128x128xbf16, #tpu.memory_space<vmem>>, vector<128x128xbf16>
    %cst_11 = arith.constant dense<0.000000e+00> : vector<8x128xf32>
    %14 = tpu.matmul %11, %13, %cst_11 {dimension_numbers = #tpu.dot_dimension_numbers<[1], [0], [0], [1], [0, 0, 1, 1], [], []>} : vector<8x128xbf16>, vector<128x128xbf16>, vector<8x128xf32> -> vector<8x128xf32>
    %15 = arith.addf %12, %14 : vector<8x128xf32>
    %c0_12 = arith.constant 0 : index
    %c0_13 = arith.constant 0 : index
    %16 = vector.load %arg11[%c0_12, %c0_13] : memref<8x128xf32, #tpu.memory_space<vmem>>, vector<8x128xf32>
    tpu.vector_store %arg11[%c0_12, %c0_13], %15 {strides = array<i32>} : memref<8x128xf32, #tpu.memory_space<vmem>>, vector<8x128xf32>,
    %c0_i32_14 = arith.constant 0 : i32
    %17 = arith.cmpi eq, %arg1, %c0_i32_14 : i32
    %18 = arith.extui %17 : i1 to i32
    %c0_i32_15 = arith.constant 0 : i32
    %19 = arith.cmpi ne, %18, %c0_i32_15 : i32
    scf.if %19 {
      %c0_16 = arith.constant 0 : index
      %c0_17 = arith.constant 0 : index
      %20 = vector.load %arg11[%c0_16, %c0_17] : memref<8x128xf32, #tpu.memory_space<vmem>>, vector<8x128xf32>
      %c0_18 = arith.constant 0 : index
      %c0_19 = arith.constant 0 : index
      %21 = vector.load %arg8[%c0_18, %c0_19] : memref<1x128xf32, #tpu.memory_space<vmem>>, vector<1x128xf32>
      %22 = vector.broadcast %21 : vector<1x128xf32> to vector<8x128xf32>
      %23 = arith.addf %20, %22 : vector<8x128xf32>
      %c0_20 = arith.constant 0 : index
      %c0_21 = arith.constant 0 : index
      %24 = vector.load %arg2[%c0_20, %c0_21] : memref<8x128xf32, #tpu.memory_space<vmem>>, vector<8x128xf32>
      %25 = arith.addf %23, %24 : vector<8x128xf32>
      %c0_22 = arith.constant 0 : index
      %c0_23 = arith.constant 0 : index
      %26 = vector.load %arg9[%c0_22, %c0_23] : memref<8x128xf32, #tpu.memory_space<vmem>>, vector<8x128xf32>
      tpu.vector_store %arg9[%c0_22, %c0_23], %25 {strides = array<i32>} : memref<8x128xf32, #tpu.memory_space<vmem>>, vector<8x128xf32>,
    } else {
    }
    return
  }
  func.func @transform_0(%arg0: i32, %arg1: i32) -> (i32, i32) {
    %c0_i32 = arith.constant 0 : i32
    %c0_i32_0 = arith.constant 0 : i32
    return %arg0, %c0_i32 : i32, i32
  }
  func.func @transform_1(%arg0: i32, %arg1: i32) -> (i32, i32) {
    %c0_i32 = arith.constant 0 : i32
    %c0_i32_0 = arith.constant 0 : i32
    %c0_i32_1 = arith.constant 0 : i32
    return %c0_i32, %c0_i32_0 : i32, i32
  }
  func.func @transform_2(%arg0: i32, %arg1: i32) -> (i32, i32) {
    %c0_i32 = arith.constant 0 : i32
    %c0_i32_0 = arith.constant 0 : i32
    %c0_i32_1 = arith.constant 0 : i32
    return %c0_i32, %c0_i32_0 : i32, i32
  }
  func.func @transform_3(%arg0: i32, %arg1: i32) -> (i32, i32) {
    %c0_i32 = arith.constant 0 : i32
    %c0_i32_0 = arith.constant 0 : i32
    return %c0_i32, %arg1 : i32, i32
  }
  func.func @transform_4(%arg0: i32, %arg1: i32) -> (i32, i32) {
    %c0_i32 = arith.constant 0 : i32
    %c0_i32_0 = arith.constant 0 : i32
    return %c0_i32, %arg1 : i32, i32
  }
  func.func @transform_5(%arg0: i32, %arg1: i32) -> (i32, i32) {
    %c0_i32 = arith.constant 0 : i32
    %c0_i32_0 = arith.constant 0 : i32
    return %arg1, %c0_i32 : i32, i32
  }
  func.func @transform_6(%arg0: i32, %arg1: i32) -> (i32, i32) {
    %c0_i32 = arith.constant 0 : i32
    %c0_i32_0 = arith.constant 0 : i32
    %c0_i32_1 = arith.constant 0 : i32
    return %c0_i32, %c0_i32_0 : i32, i32
  }
  func.func @transform_7(%arg0: i32, %arg1: i32) -> (i32, i32) {
    %c0_i32 = arith.constant 0 : i32
    %c0_i32_0 = arith.constant 0 : i32
    return %arg0, %c0_i32 : i32, i32
  }
}

</mosaic_0001>

<bundles_post_ra>
// kernel: tpu_custom_call.1
= control target key start
LH: loop header
LB: loop body
LE: loop exit
PB: predicated region body
PF: predicated region fallthrough
CT: control target
= control target key end

     0   :  { %s1395_s0 = inlined_call_operand.hbm [shape: f32[16,128], index: 0, kind: input, shape index: {}]   ;;  %s1396_s1 = inlined_call_operand.hbm [shape: f32[1,128], index: 1, kind: input, shape index: {}]   ;;  %s1397_s2 = inlined_call_operand.vmem [shape: f32[1,128], index: 2, kind: input, shape index: {}]   ;;  %s1398_s3 = inlined_call_operand.hbm [shape: bf16[128,128], index: 3, kind: input, shape index: {}]   ;;  %s1399_s4 = inlined_call_operand.vmem [shape: f32[1,128], index: 4, kind: input, shape index: {}]   ;;  %s1400_s5 = inlined_call_operand.hbm [shape: bf16[128,128], index: 5, kind: input, shape index: {}]   ;;  %s1401_s6 = inlined_call_operand.vmem [shape: f32[1,128], index: 6, kind: input, shape index: {}]   ;;  %s1402_s7 = inlined_call_operand.hbm [shape: f32[16,128], index: 7, kind: output, shape index: {}]  }
   0x1   :  { %1403 = sst [smem:[#allocation17_spill]] %s1396_s1 }
   0x2   :  { %1404 = sst [smem:[#allocation18_spill]] %s1398_s3 }
   0x3   :  { %1405 = sst [smem:[#allocation19_spill]] %s1400_s5 }
   0x4   :  { %12 = vsyncpa [#allocation5], 0 }
   0x5   :  { %14 = vsyncpa [#allocation5 + $0x1], 0 }
   0x6   :  { %15 = vsyncpa [#allocation8], 0 }
   0x7   :  { %16 = vsyncpa [#allocation11], 0 }
   0x8   :  { %17 = vsyncpa [#allocation6], 0 }
   0x9   :  { %19 = vsyncpa [#allocation6 + $0x1], 0  ;;  %s1206_s24 = smov 0   ;;  %s1208_s25 = smov 0  }
   0xa   :  { %s1210_s26 = smov 0   ;;  %s1212_s27 = smov 0  }
   0xb   :  { %s1214_s28 = smov 0   ;;  %s1216_s29 = smov 0  }
   0xc LB: > { %s745_s30 = sadd.s32 4294967295, %s1158_s29   ;;  %s746_s8 = sadd.s32 4294967294, %s1158_s29   ;;  %s1158_s29 = sphi %s1216_s29, %s25_s29   ;;  %s1154_s28 = sphi %s1214_s28, %s1421_s28   ;;  %s1150_s27 = sphi %s1212_s27, %s1420_s27   ;;  %s1146_s26 = sphi %s1210_s26, %s1419_s26   ;;  %s1142_s25 = sphi %s1208_s25, %s1418_s25   ;;  %s1138_s24 = sphi %s1206_s24, %s1417_s24  }
   0xd   : > { %p57_p0 = scmp.ne.s32.totalorder %s1142_s25, %s1138_s24  ;;  %p1240_p1 = scmp.eq.s32.totalorder %s745_s30, 0 }
   0xe   : > { %p1244_p2 = scmp.eq.s32.totalorder %s745_s30, 1  ;;  %p228_p3 = scmp.eq.s32.totalorder %s746_s8, 1 }
   0xf   : > { %p1250_p4 = por %p1240_p1, %p57_p0  ;;  %p747_p5 = scmp.ge.s32.totalorder %s1158_s29, 1 }
  0x10   : > { %p1255_p6 = por %p228_p3, %p57_p0  ;;  %p235_p7 = scmp.lt.s32.totalorder %s1158_s29, 3 }
  0x11   : > { %s1410_s1 = sld [smem:[#allocation17_spill]]  ;;  %p752_p9 = scmp.ge.s32.totalorder %s1158_s29, 2 }
  0x12   : > { %p1263_p8 = pnand %p747_p5, %p235_p7  ;;  %s1160_s17 = smov [#allocation7]  }
  0x13   : > { %s249_s18 = sshll.u32 %s1160_s17, 4  ;;  %s1412_s3 = sld [smem:[#allocation18_spill]]  ;;  %s250_s18 = int_to_ptr.vmem [resolvable:$true] %s249_s18 }
  0x14   : > { %p862_p10 = pneg %p1263_p8  ;;  %s1161_s23 = smov [#allocation9]  }
  0x15   : > { %s265_s30 = sshll.u32 %s1161_s23, 4  ;;  %s1162_s8 = smov 64   ;;  %s266_s30 = int_to_ptr.vmem [resolvable:$true] %s265_s30 }
  0x16   : > { %p1275_p11 = pnand %p862_p10, %p1240_p1  ;;  %s1163_s13 = smov 4  }
  0x17   : > { %s247_s15 = sshll.u32 %s1410_s1, 4  ;;  %s1414_s5 = sld [smem:[#allocation19_spill]]  ;;  %s248_s15 = int_to_ptr.hbm [resolvable:$true] %s247_s15 }
  0x18   : > { %865 = dma.hbm_to_vmem [thread:$0]  (!%p1275_p11), %s248_s15, 16, %s250_s18, [#allocation8]  }
  0x19   : > { %s263_s21 = sshll.u32 %s1412_s3, 4  ;;  %s1164_s20 = smov [#allocation10]   ;;  %s264_s21 = int_to_ptr.hbm [resolvable:$true] %s263_s21 }
  0x1a   : > { %868 = dma.hbm_to_vmem [thread:$0]  (!%p1275_p11), %s264_s21, 1024, %s266_s30, [#allocation8], %s1162_s8, %s1162_s8, %s1163_s13  }
  0x1b   : > { %s288_s1 = sshll.u32 %s1164_s20, 4  ;;  %s44_s15 = sadd.s32 1, %s1146_s26  ;;  %s289_s1 = int_to_ptr.vmem [resolvable:$true] %s288_s1 }
  0x1c   : > { %s37_s18 = sadd.s32 1, %s1154_s28  ;;  %p51_p12 = scmp.ne.s32.totalorder %s1146_s26, %s1142_s25 }
  0x1d   : > { %s286_s19 = sshll.u32 %s1414_s5, 4  ;;  %p39_p13 = scmp.ge.s32.totalorder %s37_s18, 2  ;;  %s287_s19 = int_to_ptr.hbm [resolvable:$true] %s286_s19 }
  0x1e   : > { %871 = dma.hbm_to_vmem [thread:$0]  (!%p1275_p11), %s287_s19, 1024, %s289_s1, [#allocation11], %s1162_s8, %s1162_s8, %s1163_s13  }
  0x1f   : > { %p52_p0 = scmp.eq.s32.totalorder %s1158_s29, 0  ;;  %p1295_p3 = por %p1244_p2, %p51_p12 }
  0x20   : > { %p883_p5 = scmp.lt.s32.totalorder %s1158_s29, 2  ;;  %s1423_s18 = smov (%p39_p13, %s37_s18), 0 }
  0x21   : > { %p1302_p7 = por %p52_p0, %p51_p12  ;;  %s305_s1 = sand.u32 1, %s1146_s26  }
  0x22   : > { %s41_s22 = ssub.s32 %s1154_s28, %s1423_s18  ;;  %s753_s30 = sshll.u32 %s305_s1, 3 }
  0x23   : > { %p42_p10 = scmp.eq.s32.totalorder %s41_s22, 0  ;;  %s754_s8 = sshll.u32 %s1154_s28, 3 }
  0x24   : > { %s313_s17 = scalar_lea.hbm %s1395_s0, %s754_s8  ;;  %s309_s19 = scalar_lea.vmem [#allocation4], %s753_s30 }
  0x25   : > { %s1311_s10 = scalar_select %p42_p10, %s1146_s26, %s44_s15  }
  0x26   : > { %s317_s20 = sshll.u32 %s309_s19, 4  ;;  %s315_s3 = sshll.u32 %s313_s17, 4  ;;  %s318_s20 = int_to_ptr.vmem [resolvable:$true] %s317_s20  ;;  %s316_s3 = int_to_ptr.hbm [resolvable:$true] %s315_s3 }
  0x27   : > { %p873_p2 = pnand %p883_p5, %p1302_p7  ;;  %s306_s5 = scalar_lea.sflag [#allocation5], %s305_s1 }
  0x28   : > { %326 = sbr.rel (%p1263_p8) target bundleno = 595 (0x253), region = 48  ;;  %s1323_s15 = sand.u32 (!%p1263_p8), 1, %s1142_s25  }
  0x29   : > { %875 = dma.hbm_to_vmem [thread:$0]  (!%p873_p2), %s316_s3, 128, %s318_s20, %s306_s5  }
  0x2a   : > { %s756_s22 = sshll.u32 (!%p1263_p8), %s1323_s15, 3  ;;  %s329_s30 = scalar_lea.sflag (!%p1263_p8), [#allocation5], %s1323_s15 }
  0x2b   : > { %s332_s8 = scalar_lea.vmem (!%p1263_p8), [#allocation4], %s756_s22 }
  0x2d   : > { %1121 = dma.done.wait (%p1250_p4), %s329_s30, 128  }
  0x2e   : > { %1123 = vsyncadd (%p1250_p4), %s329_s30, 4294967168 }
  0x2f   : > { %1125 = dma.done.wait (%p1240_p1), [#allocation8], 1040  }
  0x30   : > { %1127 = vsyncadd (%p1240_p1), [#allocation8], 4294966256 }
  0x31   : > { %1129 = dma.done.wait (%p1240_p1), [#allocation11], 1024  }
  0x32   : > { %1131 = vsyncadd (%p1240_p1), [#allocation11], 4294966272  ;;  %v1341_v0 = vld [vmem:[%s332_s8] sm:$0xff]  ;;  %v395_v1 = vlaneseq  ;;  %v1165_v5 = vmov 0.0   ;;  %v834_v13 = vld [vmem:[#allocation9 + $0x20] sm:$0xff]  ;;  %s827_s16 = sshll.u32 %s1150_s27, 3 }
  0x33   : > { %391 = vadd.xlane.f32.xlu0 %v1341_v0  ;;  %v837_v10 = vld [vmem:[#allocation9 + $0x38] sm:$0xff]  ;;  %v836_v11 = vld [vmem:[#allocation9 + $0x30] sm:$0xff]  ;;  %v835_v12 = vld [vmem:[#allocation9 + $0x28] sm:$0xff]  ;;  %s617_s17 = scalar_lea.hbm %s1402_s7, %s827_s16  ;;  %s381_s19 = scalar_lea.vmem [#allocation12], %s756_s22 }
  0x34   : > { %v396_v2 = vand.u32 127, %v395_v1  ;;  %499 = vmatpush.bf16.msra.mxu0 %v837_v10  ;;  %v833_v14 = vld [vmem:[#allocation9 + $0x18] sm:$0xff]  ;;  %v832_v15 = vld [vmem:[#allocation9 + $0x10] sm:$0xff]  ;;  %v831_v16 = vld [vmem:[#allocation9 + $0x8] sm:$0xff]  ;;  %s619_s20 = sshll.u32 %s381_s19, 4  ;;  %s621_s30 = sshll.u32 %s617_s17, 4  ;;  %s620_s20 = int_to_ptr.vmem [resolvable:$true] %s619_s20  ;;  %s622_s30 = int_to_ptr.hbm [resolvable:$true] %s621_s30 }
  0x35   : > { %v830_v18 = vld [vmem:[#allocation9] sm:$0xff]  ;;  %v845_v21 = vld [vmem:[#allocation10 + $0x38] sm:$0xff]  ;;  %v844_v22 = vld [vmem:[#allocation10 + $0x30] sm:$0xff]  ;;  %s607_s27 = scalar_lea.sflag [#allocation6], %s1323_s15  ;;  %s1082_s8 = sshra.s32 %s622_s30, 4  ;;  %s1083_s8 = int_to_ptr.hbm [resolvable:$true] %s1082_s8 }
  0x36   : > { %vm397_vm0 = vcmp.lt.s32.totalorder %v396_v2, 32  ;;  %579 = vmatpush.bf16.msra.mxu1 %v845_v21  ;;  %v843_v25 = vld [vmem:[#allocation10 + $0x28] sm:$0xff]  ;;  %v842_v28 = vld [vmem:[#allocation10 + $0x20] sm:$0xff]  ;;  %v942_v31 = vld [vmem:[#allocation7] ss:$0 sm:$0xff]  ;;  %s1084_s3 = scalar_lea.hbm %s1083_s8, 8  ;;  %p1089_p11 = scmp.lt.s32.totalorder %s1083_s8, %s1402_s7 }
  0x37   : > { %v761_v6 = vsel %vm397_vm0, 1.0, %v1165_v5  ;;  %v841_v32 = vld [vmem:[#allocation10 + $0x18] sm:$0xff]  ;;  %v943_v34 = vld [vmem:[%s1397_s2] ss:$0 sm:$0xff]  ;;  %v840_v37 = vld [vmem:[#allocation10 + $0x10] sm:$0xff]  ;;  %p1085_p1 = scmp.ne.s32.totalorder %s1083_s8, %s1084_s3  ;;  %s1088_s22 = scalar_lea.hbm %s1402_s7, 16 }
  0x38   : > { %500 = vmatpush.bf16.msra.mxu0 %v836_v11  ;;  %v839_v41 = vld [vmem:[#allocation10 + $0x8] sm:$0xff]  ;;  %v838_v42 = vld [vmem:[#allocation10] sm:$0xff]  ;;  %p1090_p12 = scmp.lt.s32.totalorder %s1088_s22, %s1084_s3 }
  0x39   : > { %v944_v43 = vld [vmem:[%s1399_s4] ss:$0 sm:$0xff]  ;;  %p1086_p4 = pnand %p1085_p1, %p1295_p3 }
  0x3a   : > { %580 = vmatpush.bf16.msra.mxu1 %v844_v22  ;;  %v945_v49 = vld [vmem:[%s1401_s6] ss:$0 sm:$0xff]  ;;  %p1091_p13 = por %p1090_p12, %p1089_p11 }
  0x3b   : > { %p1087_p8 = pneg %p1086_p4 }
  0x3c   : > { %501 = vmatpush.bf16.msra.mxu0 %v835_v12 }
  0x3d   : > { %p1092_p0 = pnand %p1091_p13, %p1087_p8 }
  0x3e   : > { %581 = vmatpush.bf16.msra.mxu1 %v843_v25 }
  0x40   : > { %502 = vmatpush.bf16.msra.mxu0 %v834_v13 }
  0x42   : > { %582 = vmatpush.bf16.msra.mxu1 %v842_v28 }
  0x44   : > { %503 = vmatpush.bf16.msra.mxu0 %v833_v14 }
  0x46   : > { %583 = vmatpush.bf16.msra.mxu1 %v841_v32 }
  0x48   : > { %504 = vmatpush.bf16.msra.mxu0 %v832_v15 }
  0x4a   : > { %584 = vmatpush.bf16.msra.mxu1 %v840_v37 }
  0x4c   : > { %505 = vmatpush.bf16.msra.mxu0 %v831_v16 }
  0x4e   : > { %585 = vmatpush.bf16.msra.mxu1 %v839_v41 }
  0x50   : > { %506 = vmatpush.bf16.msra.mxu0 %v830_v18 }
  0x52   : > { %586 = vmatpush.bf16.msra.mxu1 %v838_v42 }
  0xa6   : > { %v392_v3 = vpop.xlane.xlu0 %391 }
  0xa7   : > { %v393_v4 = vmul.f32 0.03125, %v392_v3 }
  0xa9   : > { %v394_v7 = vsub.f32 %v1341_v0, %v393_v4 }
  0xab   : > { %v400_v8 = vmul.f32 %v761_v6, %v394_v7 }
  0xad   : > { %v401_v9 = vmul.f32 %v400_v8, %v400_v8 }
  0xaf   : > { %402 = vadd.xlane.f32.xlu0 %v401_v9 }
 0x122   : > { %v403_v17 = vpop.xlane.xlu0 %402 }
 0x123   : > { %v404_v19 = vmul.f32 0.03125, %v403_v17 }
 0x125   : > { %v405_v20 = vadd.f32 1e-06, %v404_v19 }
 0x127   : > { %946 = vrsqrt.f32 %v405_v20  ;;  %vm412_vm2 = vweird.f32 %v405_v20 }
 0x12d   : > { %v947_v23 = vpop.eup %946 }
 0x12e   : > { %v407_v24 = vmul.f32 %v947_v23, %v405_v20  ;;  %vm413_vm1 = vweird.f32 %v947_v23 }
 0x12f   : > { %vm414_vm3 = vmor %vm412_vm2, %vm413_vm1 }
 0x130   : > { %v408_v26 = vmul.f32 %v947_v23, %v407_v24 }
 0x132   : > { %v409_v27 = vmul.f32 0.5, %v408_v26 }
 0x134   : > { %v410_v29 = vsub.f32 1.5, %v409_v27 }
 0x136   : > { %v411_v30 = vmul.f32 %v947_v23, %v410_v29 }
 0x138   : > { %v415_v33 = vsel %vm414_vm3, %v947_v23, %v411_v30 }
 0x139   : > { %v416_v35 = vmul.f32 %v415_v33, %v400_v8 }
 0x13b   : > { %v421_v36 = vmul.f32 %v942_v31, %v416_v35 }
 0x13d   : > { %v426_v38 = vadd.f32 %v943_v34, %v421_v36 }
 0x13f   : > { %v427_v39 = vpack.c.bf16 %v426_v38, %v426_v38 }
 0x141   : > { %428 = vst [vmem:[#allocation2] sm:$0xf] %v427_v39 }
 0x148   : > { %v430_v40 = vld [vmem:[#allocation2] sm:$0xf] }
 0x149   : > { %507 = vmatmul.bf16.vlgmr.msra.gmra.mxu0 %v430_v40 }
 0x1c6   : > { %v508_v44 = vpop.f32.mrf.mxu0 }
 0x1c7   : > { %v509_v45 = vadd.f32 %v944_v43, %v508_v44 }
 0x1c9   : > { %v512_v46 = vmax.f32 %v509_v45, 0.0 }
 0x1cb   : > { %v513_v47 = vpack.c.bf16 %v512_v46, %v512_v46 }
 0x1cd   : > { %587 = vmatmul.bf16.vlgmr.msra.gmra.mxu1 %v513_v47 }
 0x1ce   : > { %v510_v48 = vpop.f32.mrf.mxu0 }
 0x24a   : > { %v588_v50 = vpop.f32.mrf.mxu1 }
 0x24b   : > { %v602_v51 = vadd.f32 %v945_v49, %v588_v50 }
 0x24d   : > { %v604_v52 = vadd.f32 %v602_v51, %v1341_v0 }
 0x24f   : > { %605 = vst [vmem:[%s381_s19] sm:$0xff] %v604_v52 }
 0x250   : > { %1095 = shalt.err (!%p1092_p0)
}
 0x251   : > { %860 = dma.vmem_to_hbm [thread:$0]  (%p1295_p3), %s620_s20, 128, %s622_s30, %s607_s27  }
 0x252   : > { %v590_v53 = vpop.f32.mrf.mxu1 }
 0x253 PF: > { %s633_s15 = sand.u32 1, %s1138_s24   ;;  %p877_p5 = pnand %p752_p9, %p1255_p6 }
 0x254   : > { %s634_s23 = scalar_lea.sflag [#allocation6], %s633_s15 }
 0x255   : > { %p878_p7 = pneg %p877_p5 }
 0x257   : > { %1133 = dma.done.wait (%p878_p7), %s634_s23, 128  }
 0x258   : > { %1135 = vsyncadd (%p878_p7), %s634_s23, 4294967168  ;;  %s25_s29 = sadd.s32 1, %s1158_s29   ;;  %s1417_s24 = smov %s1142_s25 }
 0x259   : > { %p22_p10 = scmp.ge.s32.totalorder %s25_s29, 4   ;;  %s1418_s25 = smov %s1146_s26 }
 0x25a   : > { %s1419_s26 = smov %s1311_s10  ;;  %s1420_s27 = smov %s1154_s28 }
 0x25b   : > { %s1421_s28 = smov %s1423_s18  ;;  %24 = sbr.rel (!%p22_p10) target bundleno = 12 (0xc), region = 118 }
 0x260   :  { %640 = vsyncpa [#allocation5], 1 }
 0x261   :  { %642 = vsyncpa [#allocation5 + $0x1], 1 }
 0x262   :  { %643 = vsyncpa [#allocation8], 1 }
 0x263   :  { %644 = vsyncpa [#allocation11], 1 }
 0x264   :  { %645 = vsyncpa [#allocation6], 1 }
 0x265   :  { %647 = vsyncpa [#allocation6 + $0x1], 1 }

// kernel: tpu_custom_call.1
= control target key start
LH: loop header
LB: loop body
LE: loop exit
PB: predicated region body
PF: predicated region fallthrough
CT: control target
= control target key end

     0   :  { %s1395_s0 = inlined_call_operand.hbm [shape: f32[16,128], index: 0, kind: input, shape index: {}]   ;;  %s1396_s1 = inlined_call_operand.hbm [shape: f32[1,128], index: 1, kind: input, shape index: {}]   ;;  %s1397_s2 = inlined_call_operand.vmem [shape: f32[1,128], index: 2, kind: input, shape index: {}]   ;;  %s1398_s3 = inlined_call_operand.hbm [shape: bf16[128,128], index: 3, kind: input, shape index: {}]   ;;  %s1399_s4 = inlined_call_operand.vmem [shape: f32[1,128], index: 4, kind: input, shape index: {}]   ;;  %s1400_s5 = inlined_call_operand.hbm [shape: bf16[128,128], index: 5, kind: input, shape index: {}]   ;;  %s1401_s6 = inlined_call_operand.vmem [shape: f32[1,128], index: 6, kind: input, shape index: {}]   ;;  %s1402_s7 = inlined_call_operand.hbm [shape: f32[16,128], index: 7, kind: output, shape index: {}]  }
   0x1   :  { %1403 = sst [smem:[#allocation17_spill]] %s1396_s1 }
   0x2   :  { %1404 = sst [smem:[#allocation18_spill]] %s1398_s3 }
   0x3   :  { %1405 = sst [smem:[#allocation19_spill]] %s1400_s5 }
   0x4   :  { %12 = vsyncpa [#allocation5], 0 }
   0x5   :  { %14 = vsyncpa [#allocation5 + $0x1], 0 }
   0x6   :  { %15 = vsyncpa [#allocation8], 0 }
   0x7   :  { %16 = vsyncpa [#allocation11], 0 }
   0x8   :  { %17 = vsyncpa [#allocation6], 0 }
   0x9   :  { %19 = vsyncpa [#allocation6 + $0x1], 0  ;;  %s1206_s24 = smov 0   ;;  %s1208_s25 = smov 0  }
   0xa   :  { %s1210_s26 = smov 0   ;;  %s1212_s27 = smov 0  }
   0xb   :  { %s1214_s28 = smov 0   ;;  %s1216_s29 = smov 0  }
   0xc LB: > { %s745_s30 = sadd.s32 4294967295, %s1158_s29   ;;  %s746_s8 = sadd.s32 4294967294, %s1158_s29   ;;  %s1158_s29 = sphi %s1216_s29, %s25_s29   ;;  %s1154_s28 = sphi %s1214_s28, %s1421_s28   ;;  %s1150_s27 = sphi %s1212_s27, %s1420_s27   ;;  %s1146_s26 = sphi %s1210_s26, %s1419_s26   ;;  %s1142_s25 = sphi %s1208_s25, %s1418_s25   ;;  %s1138_s24 = sphi %s1206_s24, %s1417_s24  }
   0xd   : > { %p57_p0 = scmp.ne.s32.totalorder %s1142_s25, %s1138_s24  ;;  %p1240_p1 = scmp.eq.s32.totalorder %s745_s30, 0 }
   0xe   : > { %p1244_p2 = scmp.eq.s32.totalorder %s745_s30, 1  ;;  %p228_p3 = scmp.eq.s32.totalorder %s746_s8, 1 }
   0xf   : > { %p1250_p4 = por %p1240_p1, %p57_p0  ;;  %p747_p5 = scmp.ge.s32.totalorder %s1158_s29, 1 }
  0x10   : > { %p1255_p6 = por %p228_p3, %p57_p0  ;;  %p235_p7 = scmp.lt.s32.totalorder %s1158_s29, 3 }
  0x11   : > { %s1410_s1 = sld [smem:[#allocation17_spill]]  ;;  %p752_p9 = scmp.ge.s32.totalorder %s1158_s29, 2 }
  0x12   : > { %p1263_p8 = pnand %p747_p5, %p235_p7  ;;  %s1160_s17 = smov [#allocation7]  }
  0x13   : > { %s249_s18 = sshll.u32 %s1160_s17, 4  ;;  %s1412_s3 = sld [smem:[#allocation18_spill]]  ;;  %s250_s18 = int_to_ptr.vmem [resolvable:$true] %s249_s18 }
  0x14   : > { %p862_p10 = pneg %p1263_p8  ;;  %s1161_s23 = smov [#allocation9]  }
  0x15   : > { %s265_s30 = sshll.u32 %s1161_s23, 4  ;;  %s1162_s8 = smov 64   ;;  %s266_s30 = int_to_ptr.vmem [resolvable:$true] %s265_s30 }
  0x16   : > { %p1275_p11 = pnand %p862_p10, %p1240_p1  ;;  %s1163_s13 = smov 4  }
  0x17   : > { %s247_s15 = sshll.u32 %s1410_s1, 4  ;;  %s1414_s5 = sld [smem:[#allocation19_spill]]  ;;  %s248_s15 = int_to_ptr.hbm [resolvable:$true] %s247_s15 }
  0x18   : > { %865 = dma.hbm_to_vmem [thread:$0]  (!%p1275_p11), %s248_s15, 16, %s250_s18, [#allocation8]  }
  0x19   : > { %s263_s21 = sshll.u32 %s1412_s3, 4  ;;  %s1164_s20 = smov [#allocation10]   ;;  %s264_s21 = int_to_ptr.hbm [resolvable:$true] %s263_s21 }
  0x1a   : > { %868 = dma.hbm_to_vmem [thread:$0]  (!%p1275_p11), %s264_s21, 1024, %s266_s30, [#allocation8], %s1162_s8, %s1162_s8, %s1163_s13  }
  0x1b   : > { %s288_s1 = sshll.u32 %s1164_s20, 4  ;;  %s44_s15 = sadd.s32 1, %s1146_s26  ;;  %s289_s1 = int_to_ptr.vmem [resolvable:$true] %s288_s1 }
  0x1c   : > { %s37_s18 = sadd.s32 1, %s1154_s28  ;;  %p51_p12 = scmp.ne.s32.totalorder %s1146_s26, %s1142_s25 }
  0x1d   : > { %s286_s19 = sshll.u32 %s1414_s5, 4  ;;  %p39_p13 = scmp.ge.s32.totalorder %s37_s18, 2  ;;  %s287_s19 = int_to_ptr.hbm [resolvable:$true] %s286_s19 }
  0x1e   : > { %871 = dma.hbm_to_vmem [thread:$0]  (!%p1275_p11), %s287_s19, 1024, %s289_s1, [#allocation11], %s1162_s8, %s1162_s8, %s1163_s13  }
  0x1f   : > { %p52_p0 = scmp.eq.s32.totalorder %s1158_s29, 0  ;;  %p1295_p3 = por %p1244_p2, %p51_p12 }
  0x20   : > { %p883_p5 = scmp.lt.s32.totalorder %s1158_s29, 2  ;;  %s1423_s18 = smov (%p39_p13, %s37_s18), 0 }
  0x21   : > { %p1302_p7 = por %p52_p0, %p51_p12  ;;  %s305_s1 = sand.u32 1, %s1146_s26  }
  0x22   : > { %s41_s22 = ssub.s32 %s1154_s28, %s1423_s18  ;;  %s753_s30 = sshll.u32 %s305_s1, 3 }
  0x23   : > { %p42_p10 = scmp.eq.s32.totalorder %s41_s22, 0  ;;  %s754_s8 = sshll.u32 %s1154_s28, 3 }
  0x24   : > { %s313_s17 = scalar_lea.hbm %s1395_s0, %s754_s8  ;;  %s309_s19 = scalar_lea.vmem [#allocation4], %s753_s30 }
  0x25   : > { %s1311_s10 = scalar_select %p42_p10, %s1146_s26, %s44_s15  }
  0x26   : > { %s317_s20 = sshll.u32 %s309_s19, 4  ;;  %s315_s3 = sshll.u32 %s313_s17, 4  ;;  %s318_s20 = int_to_ptr.vmem [resolvable:$true] %s317_s20  ;;  %s316_s3 = int_to_ptr.hbm [resolvable:$true] %s315_s3 }
  0x27   : > { %p873_p2 = pnand %p883_p5, %p1302_p7  ;;  %s306_s5 = scalar_lea.sflag [#allocation5], %s305_s1 }
  0x28   : > { %326 = sbr.rel (%p1263_p8) target bundleno = 595 (0x253), region = 48  ;;  %s1323_s15 = sand.u32 (!%p1263_p8), 1, %s1142_s25  }
  0x29   : > { %875 = dma.hbm_to_vmem [thread:$0]  (!%p873_p2), %s316_s3, 128, %s318_s20, %s306_s5  }
  0x2a   : > { %s756_s22 = sshll.u32 (!%p1263_p8), %s1323_s15, 3  ;;  %s329_s30 = scalar_lea.sflag (!%p1263_p8), [#allocation5], %s1323_s15 }
  0x2b   : > { %s332_s8 = scalar_lea.vmem (!%p1263_p8), [#allocation4], %s756_s22 }
  0x2d   : > { %1121 = dma.done.wait (%p1250_p4), %s329_s30, 128  }
  0x2e   : > { %1123 = vsyncadd (%p1250_p4), %s329_s30, 4294967168 }
  0x2f   : > { %1125 = dma.done.wait (%p1240_p1), [#allocation8], 1040  }
  0x30   : > { %1127 = vsyncadd (%p1240_p1), [#allocation8], 4294966256 }
  0x31   : > { %1129 = dma.done.wait (%p1240_p1), [#allocation11], 1024  }
  0x32   : > { %1131 = vsyncadd (%p1240_p1), [#allocation11], 4294966272  ;;  %v1341_v0 = vld [vmem:[%s332_s8] sm:$0xff]  ;;  %v395_v1 = vlaneseq  ;;  %v1165_v5 = vmov 0.0   ;;  %v834_v13 = vld [vmem:[#allocation9 + $0x20] sm:$0xff]  ;;  %s827_s16 = sshll.u32 %s1150_s27, 3 }
  0x33   : > { %391 = vadd.xlane.f32.xlu0 %v1341_v0  ;;  %v837_v10 = vld [vmem:[#allocation9 + $0x38] sm:$0xff]  ;;  %v836_v11 = vld [vmem:[#allocation9 + $0x30] sm:$0xff]  ;;  %v835_v12 = vld [vmem:[#allocation9 + $0x28] sm:$0xff]  ;;  %s617_s17 = scalar_lea.hbm %s1402_s7, %s827_s16  ;;  %s381_s19 = scalar_lea.vmem [#allocation12], %s756_s22 }
  0x34   : > { %v396_v2 = vand.u32 127, %v395_v1  ;;  %499 = vmatpush.bf16.msra.mxu0 %v837_v10  ;;  %v833_v14 = vld [vmem:[#allocation9 + $0x18] sm:$0xff]  ;;  %v832_v15 = vld [vmem:[#allocation9 + $0x10] sm:$0xff]  ;;  %v831_v16 = vld [vmem:[#allocation9 + $0x8] sm:$0xff]  ;;  %s619_s20 = sshll.u32 %s381_s19, 4  ;;  %s621_s30 = sshll.u32 %s617_s17, 4  ;;  %s620_s20 = int_to_ptr.vmem [resolvable:$true] %s619_s20  ;;  %s622_s30 = int_to_ptr.hbm [resolvable:$true] %s621_s30 }
  0x35   : > { %v830_v18 = vld [vmem:[#allocation9] sm:$0xff]  ;;  %v845_v21 = vld [vmem:[#allocation10 + $0x38] sm:$0xff]  ;;  %v844_v22 = vld [vmem:[#allocation10 + $0x30] sm:$0xff]  ;;  %s607_s27 = scalar_lea.sflag [#allocation6], %s1323_s15  ;;  %s1082_s8 = sshra.s32 %s622_s30, 4  ;;  %s1083_s8 = int_to_ptr.hbm [resolvable:$true] %s1082_s8 }
  0x36   : > { %vm397_vm0 = vcmp.lt.s32.totalorder %v396_v2, 32  ;;  %579 = vmatpush.bf16.msra.mxu1 %v845_v21  ;;  %v843_v25 = vld [vmem:[#allocation10 + $0x28] sm:$0xff]  ;;  %v842_v28 = vld [vmem:[#allocation10 + $0x20] sm:$0xff]  ;;  %v942_v31 = vld [vmem:[#allocation7] ss:$0 sm:$0xff]  ;;  %s1084_s3 = scalar_lea.hbm %s1083_s8, 8  ;;  %p1089_p11 = scmp.lt.s32.totalorder %s1083_s8, %s1402_s7 }
  0x37   : > { %v761_v6 = vsel %vm397_vm0, 1.0, %v1165_v5  ;;  %v841_v32 = vld [vmem:[#allocation10 + $0x18] sm:$0xff]  ;;  %v943_v34 = vld [vmem:[%s1397_s2] ss:$0 sm:$0xff]  ;;  %v840_v37 = vld [vmem:[#allocation10 + $0x10] sm:$0xff]  ;;  %p1085_p1 = scmp.ne.s32.totalorder %s1083_s8, %s1084_s3  ;;  %s1088_s22 = scalar_lea.hbm %s1402_s7, 16 }
  0x38   : > { %500 = vmatpush.bf16.msra.mxu0 %v836_v11  ;;  %v839_v41 = vld [vmem:[#allocation10 + $0x8] sm:$0xff]  ;;  %v838_v42 = vld [vmem:[#allocation10] sm:$0xff]  ;;  %p1090_p12 = scmp.lt.s32.totalorder %s1088_s22, %s1084_s3 }
  0x39   : > { %v944_v43 = vld [vmem:[%s1399_s4] ss:$0 sm:$0xff]  ;;  %p1086_p4 = pnand %p1085_p1, %p1295_p3 }
  0x3a   : > { %580 = vmatpush.bf16.msra.mxu1 %v844_v22  ;;  %v945_v49 = vld [vmem:[%s1401_s6] ss:$0 sm:$0xff]  ;;  %p1091_p13 = por %p1090_p12, %p1089_p11 }
  0x3b   : > { %p1087_p8 = pneg %p1086_p4 }
  0x3c   : > { %501 = vmatpush.bf16.msra.mxu0 %v835_v12 }
  0x3d   : > { %p1092_p0 = pnand %p1091_p13, %p1087_p8 }
  0x3e   : > { %581 = vmatpush.bf16.msra.mxu1 %v843_v25 }
  0x40   : > { %502 = vmatpush.bf16.msra.mxu0 %v834_v13 }
  0x42   : > { %582 = vmatpush.bf16.msra.mxu1 %v842_v28 }
  0x44   : > { %503 = vmatpush.bf16.msra.mxu0 %v833_v14 }
  0x46   : > { %583 = vmatpush.bf16.msra.mxu1 %v841_v32 }
  0x48   : > { %504 = vmatpush.bf16.msra.mxu0 %v832_v15 }
  0x4a   : > { %584 = vmatpush.bf16.msra.mxu1 %v840_v37 }
  0x4c   : > { %505 = vmatpush.bf16.msra.mxu0 %v831_v16 }
  0x4e   : > { %585 = vmatpush.bf16.msra.mxu1 %v839_v41 }
  0x50   : > { %506 = vmatpush.bf16.msra.mxu0 %v830_v18 }
  0x52   : > { %586 = vmatpush.bf16.msra.mxu1 %v838_v42 }
  0xa6   : > { %v392_v3 = vpop.xlane.xlu0 %391 }
  0xa7   : > { %v393_v4 = vmul.f32 0.03125, %v392_v3 }
  0xa9   : > { %v394_v7 = vsub.f32 %v1341_v0, %v393_v4 }
  0xab   : > { %v400_v8 = vmul.f32 %v761_v6, %v394_v7 }
  0xad   : > { %v401_v9 = vmul.f32 %v400_v8, %v400_v8 }
  0xaf   : > { %402 = vadd.xlane.f32.xlu0 %v401_v9 }
 0x122   : > { %v403_v17 = vpop.xlane.xlu0 %402 }
 0x123   : > { %v404_v19 = vmul.f32 0.03125, %v403_v17 }
 0x125   : > { %v405_v20 = vadd.f32 1e-06, %v404_v19 }
 0x127   : > { %946 = vrsqrt.f32 %v405_v20  ;;  %vm412_vm2 = vweird.f32 %v405_v20 }
 0x12d   : > { %v947_v23 = vpop.eup %946 }
 0x12e   : > { %v407_v24 = vmul.f32 %v947_v23, %v405_v20  ;;  %vm413_vm1 = vweird.f32 %v947_v23 }
 0x12f   : > { %vm414_vm3 = vmor %vm412_vm2, %vm413_vm1 }
 0x130   : > { %v408_v26 = vmul.f32 %v947_v23, %v407_v24 }
 0x132   : > { %v409_v27 = vmul.f32 0.5, %v408_v26 }
 0x134   : > { %v410_v29 = vsub.f32 1.5, %v409_v27 }
 0x136   : > { %v411_v30 = vmul.f32 %v947_v23, %v410_v29 }
 0x138   : > { %v415_v33 = vsel %vm414_vm3, %v947_v23, %v411_v30 }
 0x139   : > { %v416_v35 = vmul.f32 %v415_v33, %v400_v8 }
 0x13b   : > { %v421_v36 = vmul.f32 %v942_v31, %v416_v35 }
 0x13d   : > { %v426_v38 = vadd.f32 %v943_v34, %v421_v36 }
 0x13f   : > { %v427_v39 = vpack.c.bf16 %v426_v38, %v426_v38 }
 0x141   : > { %428 = vst [vmem:[#allocation2] sm:$0xf] %v427_v39 }
 0x148   : > { %v430_v40 = vld [vmem:[#allocation2] sm:$0xf] }
 0x149   : > { %507 = vmatmul.bf16.vlgmr.msra.gmra.mxu0 %v430_v40 }
 0x1c6   : > { %v508_v44 = vpop.f32.mrf.mxu0 }
 0x1c7   : > { %v509_v45 = vadd.f32 %v944_v43, %v508_v44 }
 0x1c9   : > { %v512_v46 = vmax.f32 %v509_v45, 0.0 }
 0x1cb   : > { %v513_v47 = vpack.c.bf16 %v512_v46, %v512_v46 }
 0x1cd   : > { %587 = vmatmul.bf16.vlgmr.msra.gmra.mxu1 %v513_v47 }
 0x1ce   : > { %v510_v48 = vpop.f32.mrf.mxu0 }
 0x24a   : > { %v588_v50 = vpop.f32.mrf.mxu1 }
 0x24b   : > { %v602_v51 = vadd.f32 %v945_v49, %v588_v50 }
 0x24d   : > { %v604_v52 = vadd.f32 %v602_v51, %v1341_v0 }
 0x24f   : > { %605 = vst [vmem:[%s381_s19] sm:$0xff] %v604_v52 }
 0x250   : > { %1095 = shalt.err (!%p1092_p0)
}
 0x251   : > { %860 = dma.vmem_to_hbm [thread:$0]  (%p1295_p3), %s620_s20, 128, %s622_s30, %s607_s27  }
 0x252   : > { %v590_v53 = vpop.f32.mrf.mxu1 }
 0x253 PF: > { %s633_s15 = sand.u32 1, %s1138_s24   ;;  %p877_p5 = pnand %p752_p9, %p1255_p6 }
 0x254   : > { %s634_s23 = scalar_lea.sflag [#allocation6], %s633_s15 }
 0x255   : > { %p878_p7 = pneg %p877_p5 }
 0x257   : > { %1133 = dma.done.wait (%p878_p7), %s634_s23, 128  }
 0x258   : > { %1135 = vsyncadd (%p878_p7), %s634_s23, 4294967168  ;;  %s25_s29 = sadd.s32 1, %s1158_s29   ;;  %s1417_s24 = smov %s1142_s25 }
 0x259   : > { %p22_p10 = scmp.ge.s32.totalorder %s25_s29, 4   ;;  %s1418_s25 = smov %s1146_s26 }
 0x25a   : > { %s1419_s26 = smov %s1311_s10  ;;  %s1420_s27 = smov %s1154_s28 }
 0x25b   : > { %s1421_s28 = smov %s1423_s18  ;;  %24 = sbr.rel (!%p22_p10) target bundleno = 12 (0xc), region = 118 }
 0x260   :  { %640 = vsyncpa [#allocation5], 1 }
 0x261   :  { %642 = vsyncpa [#allocation5 + $0x1], 1 }
 0x262   :  { %643 = vsyncpa [#allocation8], 1 }
 0x263   :  { %644 = vsyncpa [#allocation11], 1 }
 0x264   :  { %645 = vsyncpa [#allocation6], 1 }
 0x265   :  { %647 = vsyncpa [#allocation6 + $0x1], 1 }

</bundles_post_ra>
